<compile_context>
chip_gen: v7x
topology: tpu7x:2x2x1
jax: 0.10.0
libtpu: 0.0.40
codegen_flags: <defaults>
</compile_context>

<pallas_src>
import jax
import jax.numpy as jnp
from jax.experimental import pallas as pl
from jax.experimental.pallas import tpu as pltpu


def _round_up(x, m):
    return ((x + m - 1) // m) * m


def drug_rl_agent_kernel(x_ref, w1_ref, b1_ref, w2_ref, b2_ref, o_ref):
    # fc1: (TB, S) @ (S, H) + (1, H), ReLU.  f32 accumulation on the MXU.
    h = jnp.dot(x_ref[...], w1_ref[...], preferred_element_type=jnp.float32)
    h = jnp.maximum(h + b1_ref[...], 0.0)
    # fc2: (TB, H) @ (H, A) + (1, A).  Narrow A=4 output -> masked stores,
    # which is far cheaper than 128-lane padding the HBM output.
    out = jnp.dot(h.astype(w2_ref.dtype), w2_ref[...],
                  preferred_element_type=jnp.float32)
    o_ref[...] = (out + b2_ref[...]).astype(o_ref.dtype)


def reference_forward(state, w1, b1, w2, b2):
    h = jnp.maximum(state @ w1 + b1, 0.0)
    return h @ w2 + b2


def drug_rl_agent_forward(state, w1, b1, w2, b2, *, tb=4096, use_kernel=None,
                          use_bf16=False):
    B, S = state.shape
    H = w1.shape[1]
    A = w2.shape[1]

    # Small batches: total work is <1 us; plain XLA beats kernel launch +
    # layout overhead on every TPU generation.
    if use_kernel is None:
        use_kernel = B >= 4096
    if not use_kernel:
        return reference_forward(state, w1, b1, w2, b2)

    if use_bf16:
        # Halve the dominant HBM stream (state) for the MXU dots; the bias-add
        # and ReLU epilogue stay f32 inside the kernel.
        state = state.astype(jnp.bfloat16)
        w1 = w1.astype(jnp.bfloat16)
        w2 = w2.astype(jnp.bfloat16)

    # Batch tile: sublane-aligned, capped at `tb`, and capped at ceil(B/2) so
    # there are at least 2 grid steps for the 2 TensorCores on v7x.
    tb = max(8, _round_up(tb, 8))
    TB = max(8, min(tb, _round_up(pl.cdiv(B, 2), 8)))
    grid = pl.cdiv(B, TB)  # ragged last tile handled by Pallas (masked writes)

    resident = dict(pipeline_mode=pl.Buffered(1))  # constant blocks: 1 buffer

    out = pl.pallas_call(
        drug_rl_agent_kernel,
        out_shape=jax.ShapeDtypeStruct((B, A), jnp.float32),
        grid=(grid,),
        in_specs=[
            pl.BlockSpec((TB, S), lambda i: (i, 0)),              # state stream
            pl.BlockSpec((S, H), lambda i: (0, 0), **resident),   # w1
            pl.BlockSpec((1, H), lambda i: (0, 0), **resident),   # b1
            pl.BlockSpec((H, A), lambda i: (0, 0), **resident),   # w2
            pl.BlockSpec((1, A), lambda i: (0, 0), **resident),   # b2
        ],
        out_specs=pl.BlockSpec((TB, A), lambda i: (i, 0)),
        compiler_params=pltpu.CompilerParams(
            dimension_semantics=("parallel",)  # batch tiles independent
        ),
    )(state, w1, b1, w2, b2)
    return out


def init_params(key, state_dim, action_dim, hidden=32):
    # Deterministic init mimicking nn.Linear's U(-1/sqrt(fan_in), 1/sqrt(fan_in)).
    k1, k2, k3, k4 = jax.random.split(key, 4)
    bound1 = 1.0 / jnp.sqrt(state_dim)
    bound2 = 1.0 / jnp.sqrt(hidden)
    # Stored as (in_dim, out_dim): transpose of PyTorch's (out_dim, in_dim).
    w1 = jax.random.uniform(k1, (state_dim, hidden), jnp.float32, -bound1, bound1)
    b1 = jax.random.uniform(k2, (1, hidden), jnp.float32, -bound1, bound1)
    w2 = jax.random.uniform(k3, (hidden, action_dim), jnp.float32, -bound2, bound2)
    b2 = jax.random.uniform(k4, (1, action_dim), jnp.float32, -bound2, bound2)
    return w1, b1, w2, b2


if __name__ == "__main__":
    key = jax.random.PRNGKey(0)
    k_in, k_in2, k_params = jax.random.split(key, 3)

    STATE_DIM, ACTION_DIM = 16, 4
    w1, b1, w2, b2 = init_params(k_params, STATE_DIM, ACTION_DIM)

    # Small case (matches the toy module usage).  Force the kernel path once to
    # exercise it, and also check the auto (pure-jnp fallback) path.
    B_small = 8
    state_small = jax.random.normal(k_in, (B_small, STATE_DIM), dtype=jnp.float32)
    ref_small = reference_forward(state_small, w1, b1, w2, b2)

    out_small = jax.block_until_ready(
        drug_rl_agent_forward(state_small, w1, b1, w2, b2, use_kernel=True))
    assert out_small.shape == (B_small, ACTION_DIM)
    assert jnp.allclose(out_small, ref_small, atol=1e-5, rtol=1e-5)

    out_small_auto = jax.block_until_ready(
        drug_rl_agent_forward(state_small, w1, b1, w2, b2))  # fallback path
    assert jnp.allclose(out_small_auto, ref_small, atol=1e-6, rtol=1e-6)

    # Non-multiple batch: exercises grid=2 (both TCs on v7x), the ragged last
    # tile (masked reads/writes, no wrapper pad), and narrow masked stores.
    B_big = 1000
    state_big = jax.random.normal(k_in2, (B_big, STATE_DIM), dtype=jnp.float32)
    ref_big = reference_forward(state_big, w1, b1, w2, b2)

    out_big = jax.block_until_ready(
        drug_rl_agent_forward(state_big, w1, b1, w2, b2, use_kernel=True))
    assert out_big.shape == (B_big, ACTION_DIM)
    assert jnp.allclose(out_big, ref_big, atol=1e-5, rtol=1e-5)

    # bf16 streamed-operand variant (looser tolerance vs the f32 reference).
    out_big_bf16 = jax.block_until_ready(
        drug_rl_agent_forward(state_big, w1, b1, w2, b2,
                              use_kernel=True, use_bf16=True))
    assert out_big_bf16.shape == (B_big, ACTION_DIM)
    assert jnp.allclose(out_big_bf16, ref_big, atol=5e-2, rtol=5e-2)

    print("KERNEL_OK")
</pallas_src>

<mosaic_0001>
module attributes {stable_mosaic.version = 11 : i64} {
  func.func @drug_rl_agent_kernel(%arg0: i32, %arg1: memref<8x16xf32, #tpu.memory_space<vmem>>, %arg2: memref<16x32xf32, #tpu.memory_space<vmem>>, %arg3: memref<1x32xf32, #tpu.memory_space<vmem>>, %arg4: memref<32x4xf32, #tpu.memory_space<vmem>>, %arg5: memref<1x4xf32, #tpu.memory_space<vmem>>, %arg6: memref<8x4xf32, #tpu.memory_space<vmem>>) attributes {dimension_semantics = [#tpu.dimension_semantics<parallel>], iteration_bounds = array<i64: 1>, scalar_prefetch = 0 : i64, scratch_operands = 0 : i64, tpu.core_type = #tpu.core_type<tc>, window_params = [{transform_indices = @transform_0, window_bounds = array<i64: 8, 16>}, {pipeline_mode = #tpu.pipeline_mode<synchronous>, transform_indices = @transform_1, window_bounds = array<i64: 16, 32>}, {pipeline_mode = #tpu.pipeline_mode<synchronous>, transform_indices = @transform_2, window_bounds = array<i64: 1, 32>}, {pipeline_mode = #tpu.pipeline_mode<synchronous>, transform_indices = @transform_3, window_bounds = array<i64: 32, 4>}, {pipeline_mode = #tpu.pipeline_mode<synchronous>, transform_indices = @transform_4, window_bounds = array<i64: 1, 4>}, {transform_indices = @transform_5, window_bounds = array<i64: 8, 4>}]} {
    %c0 = arith.constant 0 : index
    %c0_0 = arith.constant 0 : index
    %0 = vector.load %arg1[%c0, %c0_0] : memref<8x16xf32, #tpu.memory_space<vmem>>, vector<8x16xf32>
    %c0_1 = arith.constant 0 : index
    %c0_2 = arith.constant 0 : index
    %1 = vector.load %arg2[%c0_1, %c0_2] : memref<16x32xf32, #tpu.memory_space<vmem>>, vector<16x32xf32>
    %cst = arith.constant dense<0.000000e+00> : vector<8x32xf32>
    %2 = tpu.matmul %0, %1, %cst {dimension_numbers = #tpu.dot_dimension_numbers<[1], [0], [0], [1], [0, 0, 1, 1], [], []>} : vector<8x16xf32>, vector<16x32xf32>, vector<8x32xf32> -> vector<8x32xf32>
    %c0_3 = arith.constant 0 : index
    %c0_4 = arith.constant 0 : index
    %3 = vector.load %arg3[%c0_3, %c0_4] : memref<1x32xf32, #tpu.memory_space<vmem>>, vector<1x32xf32>
    %4 = vector.broadcast %3 : vector<1x32xf32> to vector<8x32xf32>
    %5 = arith.addf %2, %4 : vector<8x32xf32>
    %cst_5 = arith.constant 0.000000e+00 : f32
    %6 = vector.broadcast %cst_5 : f32 to vector<8x32xf32>
    %7 = arith.maximumf %5, %6 : vector<8x32xf32>
    %c0_6 = arith.constant 0 : index
    %c0_7 = arith.constant 0 : index
    %8 = vector.load %arg4[%c0_6, %c0_7] : memref<32x4xf32, #tpu.memory_space<vmem>>, vector<32x4xf32>
    %cst_8 = arith.constant dense<0.000000e+00> : vector<8x4xf32>
    %9 = tpu.matmul %7, %8, %cst_8 {dimension_numbers = #tpu.dot_dimension_numbers<[1], [0], [0], [1], [0, 0, 1, 1], [], []>} : vector<8x32xf32>, vector<32x4xf32>, vector<8x4xf32> -> vector<8x4xf32>
    %c0_9 = arith.constant 0 : index
    %c0_10 = arith.constant 0 : index
    %10 = vector.load %arg5[%c0_9, %c0_10] : memref<1x4xf32, #tpu.memory_space<vmem>>, vector<1x4xf32>
    %11 = vector.broadcast %10 : vector<1x4xf32> to vector<8x4xf32>
    %12 = arith.addf %9, %11 : vector<8x4xf32>
    %c0_11 = arith.constant 0 : index
    %c0_12 = arith.constant 0 : index
    %13 = vector.load %arg6[%c0_11, %c0_12] : memref<8x4xf32, #tpu.memory_space<vmem>>, vector<8x4xf32>
    tpu.vector_store %arg6[%c0_11, %c0_12], %12 {strides = array<i32>} : memref<8x4xf32, #tpu.memory_space<vmem>>, vector<8x4xf32>,
    return
  }
  func.func @transform_0(%arg0: i32) -> (i32, i32) {
    %c0_i32 = arith.constant 0 : i32
    %c0_i32_0 = arith.constant 0 : i32
    return %arg0, %c0_i32 : i32, i32
  }
  func.func @transform_1(%arg0: i32) -> (i32, i32) {
    %c0_i32 = arith.constant 0 : i32
    %c0_i32_0 = arith.constant 0 : i32
    %c0_i32_1 = arith.constant 0 : i32
    return %c0_i32, %c0_i32_0 : i32, i32
  }
  func.func @transform_2(%arg0: i32) -> (i32, i32) {
    %c0_i32 = arith.constant 0 : i32
    %c0_i32_0 = arith.constant 0 : i32
    %c0_i32_1 = arith.constant 0 : i32
    return %c0_i32, %c0_i32_0 : i32, i32
  }
  func.func @transform_3(%arg0: i32) -> (i32, i32) {
    %c0_i32 = arith.constant 0 : i32
    %c0_i32_0 = arith.constant 0 : i32
    %c0_i32_1 = arith.constant 0 : i32
    return %c0_i32, %c0_i32_0 : i32, i32
  }
  func.func @transform_4(%arg0: i32) -> (i32, i32) {
    %c0_i32 = arith.constant 0 : i32
    %c0_i32_0 = arith.constant 0 : i32
    %c0_i32_1 = arith.constant 0 : i32
    return %c0_i32, %c0_i32_0 : i32, i32
  }
  func.func @transform_5(%arg0: i32) -> (i32, i32) {
    %c0_i32 = arith.constant 0 : i32
    %c0_i32_0 = arith.constant 0 : i32
    return %arg0, %c0_i32 : i32, i32
  }
}

</mosaic_0001>

<bundles_post_ra>
// kernel: tpu_custom_call.1
= control target key start
LH: loop header
LB: loop body
LE: loop exit
PB: predicated region body
PF: predicated region fallthrough
CT: control target
= control target key end

     0   :  { %v238_v0 = vmov 0.0|0.0   ;;  %vm239_vm0 = vmmov 0   ;;  %v240_v3 = vmov 0.0   ;;  %vm30_vm1 = vcmask 130048   ;;  %s301_s1 = inlined_call_operand.vmem [shape: f32[16,32], index: 1, kind: input, shape index: {}]   ;;  %s302_s3 = inlined_call_operand.vmem [shape: f32[32,4], index: 3, kind: input, shape index: {}]   ;;  %s303_s0 = inlined_call_operand.vmem [shape: f32[8,16], index: 0, kind: input, shape index: {}]   ;;  %s304_s2 = inlined_call_operand.vmem [shape: f32[1,32], index: 2, kind: input, shape index: {}]   ;;  %s305_s4 = inlined_call_operand.vmem [shape: f32[1,4], index: 4, kind: input, shape index: {}]   ;;  %s306_s5 = inlined_call_operand.vmem [shape: f32[8,4], index: 5, kind: output, shape index: {}]  }
   0x1   :  { %226 = vmatprep.subr.bf16.mxu0 %v238_v0  ;;  %v21_v1 = vld [vmem:[%s301_s1] sm:$0xff]  ;;  %v22_v2 = vld [vmem:[%s301_s1 + $0x8] sm:$0xff]  ;;  %212 = vmatprep.mubr.msk.f32.mxu0 %vm239_vm0, %v240_v3  ;;  %v107_v9 = vld [vmem:[%s302_s3 + $0x10] sm:$0xff]  ;;  %vm116_vm2 = vcmask 261120   ;;  %vm190_vm3 = vcmask 31744  }
   0x2   :  { %v227_v4 = vpack.c.bf16 %v22_v2, %v21_v1  ;;  %229 = vmatprep.subr.bf16.mxu1 %v238_v0  ;;  %v105_v5 = vld [vmem:[%s302_s3] sm:$0xff]  ;;  %v106_v6 = vld [vmem:[%s302_s3 + $0x8] sm:$0xff]  ;;  %223 = vmatprep.mubr.msk.f32.mxu1 %vm239_vm0, %v240_v3  ;;  %v108_v10 = vld [vmem:[%s302_s3 + $0x18] sm:$0xff] }
   0x3   :  { %v230_v7 = vpack.c.bf16 %v106_v6, %v105_v5  ;;  %v20_v8 = vld [vmem:[%s303_s0] sm:$0xff]  ;;  %v233_v11 = vpack.c.bf16 %v108_v10, %v107_v9 }
   0x4   :  { %228 = vmatpush3.bf16.msra.mxu0 %v227_v4  ;;  %v196_v12 = vld [vmem:[%s304_s2] ss:$0 sm:$0xff] }
   0x5   :  { %231 = vmatpush3.bf16.msra.mxu1 %v230_v7  ;;  %v198_v17 = vld [vmem:[%s305_s4] ss:$0 sm:$0xff] }
   0x6   :  { %232 = vmatprep.subr.bf16.mxu1 %v238_v0 }
   0x7   :  { %213 = vmatmul.mubr.msk.f32.vlgmr.msra.gmra.mrb[0].mxu0 %vm30_vm1, %v20_v8 }
   0x9   :  { %234 = vmatpush3.bf16.msra.mxu1 %v233_v11 }
  0xda   :  { %v100_v13 = vpop.f32.mrb[0].mxu0 }
  0xdb   :  { %v101_v14 = vadd.f32 %v196_v12, %v100_v13  ;;  %v214_v15 = vpop.f32.mrb[1].mxu0 }
  0xdd   :  { %v104_v16 = vmax.f32 %v101_v14, 0.0 }
  0xdf   :  { %224 = vmatmul.mubr.msk.f32.vlgmr.msra.gmra.mrb[0].mxu1 %vm116_vm2, %v104_v16 }
 0x1b2   :  { %v186_v18 = vpop.f32.mrb[0].mxu1 }
 0x1b3   :  { %v187_v19 = vadd.f32 %v198_v17, %v186_v18  ;;  %v225_v20 = vpop.f32.mrb[1].mxu1 }
 0x1b5   :  { %191 = vst.msk [vmem:[%s306_s5] sm:$0xff] %vm190_vm3, %v187_v19 }

</bundles_post_ra>
